<compile_context>
chip_gen: v7x
topology: tpu7x:2x2x1
jax: 0.10.0
libtpu: 0.0.40
codegen_flags: <defaults>
</compile_context>

<pallas_src>
import functools
import math

import jax
import jax.numpy as jnp
from jax.experimental import pallas as pl
from jax.experimental.pallas import tpu as pltpu

EPS = 1e-5
LANE = 128
SUBLANE = 8


def _gelu_exact(x):
    # nn.GELU() default: 0.5 * x * (1 + erf(x / sqrt(2)))
    return 0.5 * x * (1.0 + jax.lax.erf(x * (1.0 / math.sqrt(2.0))))


def _round_up(v, m):
    return ((v + m - 1) // m) * m


def _pad_dim(a, axis, mult):
    pad = (-a.shape[axis]) % mult
    if pad == 0:
        return a
    widths = [(0, 0)] * a.ndim
    widths[axis] = (0, pad)
    return jnp.pad(a, widths)


def _nbytes(a):
    return int(a.size * a.dtype.itemsize)


@functools.cache
def _single_buffer_ok():
    """Probe whether pipeline_mode=pl.Buffered(1) is accepted by this backend."""
    def _probe(x_ref, o_ref):
        o_ref[...] = x_ref[...] + 1.0

    try:
        fn = pl.pallas_call(
            _probe,
            grid=(2,),
            in_specs=[pl.BlockSpec((8, 128), lambda i: (0, 0),
                                   pipeline_mode=pl.Buffered(1))],
            out_specs=pl.BlockSpec((8, 128), lambda i: (i, 0)),
            out_shape=jax.ShapeDtypeStruct((16, 128), jnp.float32),
        )
        jax.block_until_ready(fn(jnp.zeros((8, 128), jnp.float32)))
        return True
    except Exception:  # pragma: no cover - older jax without Buffered(1)
        return False


# ----------------------------- kernels --------------------------------------


def _linear_stats_kernel(x_ref, w_ref, h_ref, ps_ref, pq_ref):
    """Layer 1: h = x @ W1 (b1 dropped: exactly cancelled by BN1's mean
    subtraction).  Stores the bf16 activation and per-tile partial BN stats.
    Zero-padded batch rows contribute exact zeros to the stats (no bias)."""
    h = jnp.dot(x_ref[...], w_ref[...], preferred_element_type=jnp.float32)
    h_ref[...] = h.astype(h_ref.dtype)
    ps = jnp.sum(h, axis=0, keepdims=True)
    pq = jnp.sum(h * h, axis=0, keepdims=True)
    ps_ref[...] = jnp.broadcast_to(ps[None], ps_ref.shape)
    pq_ref[...] = jnp.broadcast_to(pq[None], pq_ref.shape)


def _bn_gelu_linear_stats_kernel(h_ref, scale_ref, shift_ref, w_ref,
                                 o_ref, ps_ref, pq_ref, *, bt, n_valid, masked):
    """BN1 (hoisted scale/shift) + GELU + Linear2 (b2 dropped, BN-cancelled),
    plus per-tile partial stats for BN2 (padded rows masked out)."""
    h = h_ref[...].astype(jnp.float32)
    a = _gelu_exact(h * scale_ref[...] + shift_ref[...])
    o = jnp.dot(a.astype(jnp.bfloat16), w_ref[...],
                preferred_element_type=jnp.float32)
    o_ref[...] = o.astype(o_ref.dtype)

    om = o
    if masked:
        row = (jax.lax.broadcasted_iota(jnp.int32, (bt, 1), 0)
               + pl.program_id(0) * bt)
        om = jnp.where(row < n_valid, o, 0.0)
    ps = jnp.sum(om, axis=0, keepdims=True)
    pq = jnp.sum(om * o, axis=0, keepdims=True)      # mask^2 == mask
    ps_ref[...] = jnp.broadcast_to(ps[None], ps_ref.shape)
    pq_ref[...] = jnp.broadcast_to(pq[None], pq_ref.shape)


def _bn_gelu_linear_out_kernel(h_ref, scale_ref, shift_ref, w_ref, b_ref, o_ref):
    """BN2 (hoisted scale/shift) + GELU + output Linear (bias kept)."""
    h = h_ref[...].astype(jnp.float32)
    a = _gelu_exact(h * scale_ref[...] + shift_ref[...])
    o_ref[...] = (jnp.dot(a.astype(jnp.bfloat16), w_ref[...],
                          preferred_element_type=jnp.float32) + b_ref[...])


# ----------------------------- wrapper ---------------------------------------


def projection_head_pallas(x, params, *, batch_tile=512):
    """x: (N, in_dim) float32.  params: dict of weights (see init_params)."""
    n, _ = x.shape
    out_dim = params["w3"].shape[1]
    f32, bf16 = jnp.float32, jnp.bfloat16

    # Batch tiling: tile is a multiple of 16 (bf16 sublane packing); N is
    # zero-padded up to a tile multiple, padded rows masked out of the stats.
    bt = min(batch_tile, _round_up(n, 16))
    bt = _round_up(max(bt, 16), 16)
    n_pad = _round_up(n, bt)
    nb = n_pad // bt
    masked = n_pad != n

    # Zero-pad every feature dim to a multiple of 128 lanes (exact: padded W
    # columns give zero activations with zero gamma/beta, padded W rows are
    # zero, padded output columns are sliced off).  MXU inputs are bf16.
    xb = _pad_dim(_pad_dim(x, 0, bt), 1, LANE).astype(bf16)
    w1 = _pad_dim(_pad_dim(params["w1"], 0, LANE), 1, LANE).astype(bf16)
    w2 = _pad_dim(_pad_dim(params["w2"], 0, LANE), 1, LANE).astype(bf16)
    w3 = _pad_dim(_pad_dim(params["w3"], 0, LANE), 1, LANE).astype(bf16)
    b3 = _pad_dim(params["b3"], 1, LANE)
    g1 = _pad_dim(params["g1"], 1, LANE)
    be1 = _pad_dim(params["be1"], 1, LANE)
    g2 = _pad_dim(params["g2"], 1, LANE)
    be2 = _pad_dim(params["be2"], 1, LANE)

    in_p, hid_p = w1.shape
    mid_p = w2.shape[1]
    out_p = w3.shape[1]
    inv_n = 1.0 / n

    buffered_ok = _single_buffer_ok()

    def row_spec(r, c):          # batch-tiled streaming block
        return pl.BlockSpec((r, c), lambda i: (i, 0))

    def const_spec(shape):       # index-invariant block (weights, scale/shift, b3)
        if buffered_ok:
            return pl.BlockSpec(shape, lambda i: (0,) * len(shape),
                                pipeline_mode=pl.Buffered(1))
        return pl.BlockSpec(shape, lambda i: (0,) * len(shape))

    def stat_spec(c):            # per-tile partial-stats block
        return pl.BlockSpec((1, SUBLANE, c), lambda i: (i, 0, 0))

    def vmem_limit(resident, stream):
        # resident blocks (single- or double-buffered) + double-buffered
        # streaming blocks + slack for compiler-internal scratch/semaphores.
        bufs = 1 if buffered_ok else 2
        need = bufs * resident + 2 * stream + (4 << 20)
        return int(min(max(need, 16 << 20), 100 << 20))

    def bn_affine(ps, pq, gamma, beta):
        # Reduce per-tile partial sums (tiny XLA op) and hoist BN scale/shift.
        s = jnp.sum(ps[:, 0, :], axis=0, keepdims=True)
        q = jnp.sum(pq[:, 0, :], axis=0, keepdims=True)
        mean = s * inv_n
        var = jnp.maximum(q * inv_n - mean * mean, 0.0)   # one-pass batch var
        scale = gamma * jax.lax.rsqrt(var + EPS)
        return scale, beta - mean * scale

    # ---- layer 1: Linear (+ partial stats for BN1) ---------------------------
    h1, ps1, pq1 = pl.pallas_call(
        _linear_stats_kernel,
        grid=(nb,),
        in_specs=[row_spec(bt, in_p), const_spec((in_p, hid_p))],
        out_specs=(row_spec(bt, hid_p), stat_spec(hid_p), stat_spec(hid_p)),
        out_shape=(jax.ShapeDtypeStruct((n_pad, hid_p), bf16),
                   jax.ShapeDtypeStruct((nb, SUBLANE, hid_p), f32),
                   jax.ShapeDtypeStruct((nb, SUBLANE, hid_p), f32)),
        compiler_params=pltpu.CompilerParams(
            dimension_semantics=("parallel",),
            vmem_limit_bytes=vmem_limit(
                resident=_nbytes(w1),
                stream=bt * in_p * 2 + bt * hid_p * 2 + 2 * SUBLANE * hid_p * 4)),
        cost_estimate=pl.CostEstimate(
            flops=2 * n_pad * in_p * hid_p + 3 * n_pad * hid_p,
            transcendentals=0,
            bytes_accessed=_nbytes(xb) + _nbytes(w1)
            + n_pad * hid_p * 2 + 2 * nb * SUBLANE * hid_p * 4),
    )(xb, w1)

    scale1, shift1 = bn_affine(ps1, pq1, g1, be1)

    # ---- layer 2: BN1 + GELU + Linear (+ partial stats for BN2) --------------
    h2, ps2, pq2 = pl.pallas_call(
        functools.partial(_bn_gelu_linear_stats_kernel,
                          bt=bt, n_valid=n, masked=masked),
        grid=(nb,),
        in_specs=[row_spec(bt, hid_p),
                  const_spec((1, hid_p)), const_spec((1, hid_p)),
                  const_spec((hid_p, mid_p))],
        out_specs=(row_spec(bt, mid_p), stat_spec(mid_p), stat_spec(mid_p)),
        out_shape=(jax.ShapeDtypeStruct((n_pad, mid_p), bf16),
                   jax.ShapeDtypeStruct((nb, SUBLANE, mid_p), f32),
                   jax.ShapeDtypeStruct((nb, SUBLANE, mid_p), f32)),
        compiler_params=pltpu.CompilerParams(
            dimension_semantics=("parallel",),
            vmem_limit_bytes=vmem_limit(
                resident=_nbytes(w2) + 2 * hid_p * 4,
                stream=bt * hid_p * 2 + bt * mid_p * 2 + 2 * SUBLANE * mid_p * 4)),
        cost_estimate=pl.CostEstimate(
            flops=2 * n_pad * hid_p * mid_p + 10 * n_pad * hid_p + 4 * n_pad * mid_p,
            transcendentals=n_pad * hid_p,
            bytes_accessed=n_pad * hid_p * 2 + _nbytes(w2) + 4 * hid_p * 4
            + n_pad * mid_p * 2 + 2 * nb * SUBLANE * mid_p * 4),
    )(h1, scale1, shift1, w2)

    scale2, shift2 = bn_affine(ps2, pq2, g2, be2)

    # ---- layer 3: BN2 + GELU + Linear + bias ---------------------------------
    out = pl.pallas_call(
        _bn_gelu_linear_out_kernel,
        grid=(nb,),
        in_specs=[row_spec(bt, mid_p),
                  const_spec((1, mid_p)), const_spec((1, mid_p)),
                  const_spec((mid_p, out_p)), const_spec((1, out_p))],
        out_specs=row_spec(bt, out_p),
        out_shape=jax.ShapeDtypeStruct((n_pad, out_p), f32),
        compiler_params=pltpu.CompilerParams(
            dimension_semantics=("parallel",),
            vmem_limit_bytes=vmem_limit(
                resident=_nbytes(w3) + 2 * mid_p * 4 + out_p * 4,
                stream=bt * mid_p * 2 + bt * out_p * 4)),
        cost_estimate=pl.CostEstimate(
            flops=2 * n_pad * mid_p * out_p + 10 * n_pad * mid_p + n_pad * out_p,
            transcendentals=n_pad * mid_p,
            bytes_accessed=n_pad * mid_p * 2 + _nbytes(w3)
            + (2 * mid_p + 2 * out_p) * 4 + n_pad * out_p * 4),
    )(h2, scale2, shift2, w3, b3)

    return out[:n, :out_dim]


# ----------------------------- init + reference ------------------------------


def init_params(key, in_dim, hidden_dim, out_dim, projection_hidden_ratio, xavier_gain):
    """Synthetic init matching the PyTorch module's parameter shapes.

    Linear weights: xavier_normal_ with `gain`, stored transposed (in, out).
    Linear biases:  PyTorch default uniform(-1/sqrt(fan_in), 1/sqrt(fan_in)).
                    (b1/b2 exist in the module but are BN-cancelled; the kernel
                    only consumes b3.)
    BatchNorm1d:    gamma = 1, beta = 0.
    """
    mid_dim = hidden_dim // projection_hidden_ratio
    dims = [(in_dim, hidden_dim), (hidden_dim, mid_dim), (mid_dim, out_dim)]
    keys = jax.random.split(key, 6)
    params = {}
    for i, (fan_in, fan_out) in enumerate(dims, start=1):
        std = xavier_gain * math.sqrt(2.0 / (fan_in + fan_out))
        w = std * jax.random.normal(keys[2 * (i - 1)], (fan_in, fan_out), jnp.float32)
        bound = 1.0 / math.sqrt(fan_in)
        b = jax.random.uniform(
            keys[2 * (i - 1) + 1], (1, fan_out), jnp.float32, -bound, bound)
        params[f"w{i}"] = w
        params[f"b{i}"] = b
    params["g1"] = jnp.ones((1, hidden_dim), jnp.float32)
    params["be1"] = jnp.zeros((1, hidden_dim), jnp.float32)
    params["g2"] = jnp.ones((1, mid_dim), jnp.float32)
    params["be2"] = jnp.zeros((1, mid_dim), jnp.float32)
    return params


def _bf(a):
    return a.astype(jnp.bfloat16).astype(jnp.float32)


def _linear_bn_gelu_ref(x, w, b, gamma, beta):
    """Module semantics (Linear WITH bias, two-pass training-mode BN, exact
    GELU); matmul inputs and the bias-free product are rounded through bf16 to
    mirror the kernel's MXU / HBM dtypes."""
    z = _bf(x) @ _bf(w)
    h = z + b
    mean = jnp.mean(h, axis=0, keepdims=True)
    var = jnp.mean((h - mean) ** 2, axis=0, keepdims=True)
    h_q = _bf(z) + b            # kernel stores the (bias-free) product as bf16
    return _gelu_exact((h_q - mean) * jax.lax.rsqrt(var + EPS) * gamma + beta)


def projection_head_ref(x, params):
    a1 = _linear_bn_gelu_ref(x, params["w1"], params["b1"], params["g1"], params["be1"])
    a2 = _linear_bn_gelu_ref(a1, params["w2"], params["b2"], params["g2"], params["be2"])
    return _bf(a2) @ _bf(params["w3"]) + params["b3"]


if __name__ == "__main__":
    # Small config: in_dim=32, hidden_dim=64, projection_hidden_ratio=2, out_dim=16.
    # batch=72 with batch_tile=32 -> 3 batch tiles incl. padded rows: exercises
    # the grid, cross-tile BN stats reduction and the padded-row stats mask.
    in_dim, hidden_dim, out_dim = 32, 64, 16
    projection_hidden_ratio, xavier_gain = 2, 1.0
    batch = 72

    key = jax.random.PRNGKey(0)
    k_x, k_p = jax.random.split(key)
    x = jax.random.normal(k_x, (batch, in_dim), jnp.float32)
    params = init_params(
        k_p, in_dim, hidden_dim, out_dim, projection_hidden_ratio, xavier_gain)

    out = projection_head_pallas(x, params, batch_tile=32)
    out = jax.block_until_ready(out)

    ref = projection_head_ref(x, params)
    assert out.shape == (batch, out_dim)
    assert bool(jnp.all(jnp.isfinite(out)))
    # bf16 MXU inputs + bf16-stored intermediates + dropped (BN-cancelled)
    # b1/b2 + one-pass batch variance => bf16-level tolerance (values are O(1)).
    assert jnp.allclose(out, ref, atol=2e-2, rtol=2e-2), "mismatch vs JAX reference"

    print("KERNEL_OK")
</pallas_src>

<mosaic_0001>
module attributes {stable_mosaic.version = 11 : i64} {
  func.func @_probe(%arg0: i32, %arg1: memref<8x128xf32, #tpu.memory_space<vmem>>, %arg2: memref<8x128xf32, #tpu.memory_space<vmem>>) attributes {dimension_semantics = [#tpu.dimension_semantics<arbitrary>], iteration_bounds = array<i64: 2>, scalar_prefetch = 0 : i64, scratch_operands = 0 : i64, tpu.core_type = #tpu.core_type<tc>, window_params = [{pipeline_mode = #tpu.pipeline_mode<synchronous>, transform_indices = @transform_0, window_bounds = array<i64: 8, 128>}, {transform_indices = @transform_1, window_bounds = array<i64: 8, 128>}]} {
    %c0 = arith.constant 0 : index
    %c0_0 = arith.constant 0 : index
    %0 = vector.load %arg1[%c0, %c0_0] : memref<8x128xf32, #tpu.memory_space<vmem>>, vector<8x128xf32>
    %cst = arith.constant 1.000000e+00 : f32
    %1 = vector.broadcast %cst : f32 to vector<8x128xf32>
    %2 = arith.addf %0, %1 : vector<8x128xf32>
    %c0_1 = arith.constant 0 : index
    %c0_2 = arith.constant 0 : index
    %3 = vector.load %arg2[%c0_1, %c0_2] : memref<8x128xf32, #tpu.memory_space<vmem>>, vector<8x128xf32>
    tpu.vector_store %arg2[%c0_1, %c0_2], %2 {strides = array<i32>} : memref<8x128xf32, #tpu.memory_space<vmem>>, vector<8x128xf32>,
    return
  }
  func.func @transform_0(%arg0: i32) -> (i32, i32) {
    %c0_i32 = arith.constant 0 : i32
    %c0_i32_0 = arith.constant 0 : i32
    %c0_i32_1 = arith.constant 0 : i32
    return %c0_i32, %c0_i32_0 : i32, i32
  }
  func.func @transform_1(%arg0: i32) -> (i32, i32) {
    %c0_i32 = arith.constant 0 : i32
    %c0_i32_0 = arith.constant 0 : i32
    return %arg0, %c0_i32 : i32, i32
  }
}

module attributes {stable_mosaic.version = 11 : i64} {
  func.func @_linear_stats_kernel(%arg0: i32, %arg1: memref<32x128xbf16, #tpu.memory_space<vmem>>, %arg2: memref<128x128xbf16, #tpu.memory_space<vmem>>, %arg3: memref<32x128xbf16, #tpu.memory_space<vmem>>, %arg4: memref<1x8x128xf32, #tpu.memory_space<vmem>>, %arg5: memref<1x8x128xf32, #tpu.memory_space<vmem>>) attributes {dimension_semantics = [#tpu.dimension_semantics<parallel>], iteration_bounds = array<i64: 3>, scalar_prefetch = 0 : i64, scratch_operands = 0 : i64, tpu.core_type = #tpu.core_type<tc>, window_params = [{transform_indices = @transform_0, window_bounds = array<i64: 32, 128>}, {pipeline_mode = #tpu.pipeline_mode<synchronous>, transform_indices = @transform_1, window_bounds = array<i64: 128, 128>}, {transform_indices = @transform_2, window_bounds = array<i64: 32, 128>}, {transform_indices = @transform_3, window_bounds = array<i64: 1, 8, 128>}, {transform_indices = @transform_4, window_bounds = array<i64: 1, 8, 128>}]} {
    %c0 = arith.constant 0 : index
    %c0_0 = arith.constant 0 : index
    %0 = vector.load %arg1[%c0, %c0_0] : memref<32x128xbf16, #tpu.memory_space<vmem>>, vector<32x128xbf16>
    %c0_1 = arith.constant 0 : index
    %c0_2 = arith.constant 0 : index
    %1 = vector.load %arg2[%c0_1, %c0_2] : memref<128x128xbf16, #tpu.memory_space<vmem>>, vector<128x128xbf16>
    %cst = arith.constant dense<0.000000e+00> : vector<32x128xf32>
    %2 = tpu.matmul %0, %1, %cst {dimension_numbers = #tpu.dot_dimension_numbers<[1], [0], [0], [1], [0, 0, 1, 1], [], []>} : vector<32x128xbf16>, vector<128x128xbf16>, vector<32x128xf32> -> vector<32x128xf32>
    %3 = arith.truncf %2 : vector<32x128xf32> to vector<32x128xbf16>
    %c0_3 = arith.constant 0 : index
    %c0_4 = arith.constant 0 : index
    %4 = vector.load %arg3[%c0_3, %c0_4] : memref<32x128xbf16, #tpu.memory_space<vmem>>, vector<32x128xbf16>
    tpu.vector_store %arg3[%c0_3, %c0_4], %3 {strides = array<i32>} : memref<32x128xbf16, #tpu.memory_space<vmem>>, vector<32x128xbf16>,
    %cst_5 = arith.constant dense<0.000000e+00> : vector<128xf32>
    %5 = vector.multi_reduction <add>, %2, %cst_5 [0] : vector<32x128xf32> to vector<128xf32>
    %6 = vector.shape_cast %5 : vector<128xf32> to vector<1x128xf32>
    %7 = arith.mulf %2, %2 : vector<32x128xf32>
    %cst_6 = arith.constant dense<0.000000e+00> : vector<128xf32>
    %8 = vector.multi_reduction <add>, %7, %cst_6 [0] : vector<32x128xf32> to vector<128xf32>
    %9 = vector.shape_cast %8 : vector<128xf32> to vector<1x128xf32>
    %10 = vector.shape_cast %6 : vector<1x128xf32> to vector<1x1x128xf32>
    %11 = vector.shape_cast %10 : vector<1x1x128xf32> to vector<1x1x128xf32>
    %12 = vector.broadcast %11 : vector<1x1x128xf32> to vector<1x8x128xf32>
    %c0_7 = arith.constant 0 : index
    %c0_8 = arith.constant 0 : index
    %c0_9 = arith.constant 0 : index
    %13 = vector.load %arg4[%c0_7, %c0_8, %c0_9] : memref<1x8x128xf32, #tpu.memory_space<vmem>>, vector<1x8x128xf32>
    tpu.vector_store %arg4[%c0_7, %c0_8, %c0_9], %12 {strides = array<i32>} : memref<1x8x128xf32, #tpu.memory_space<vmem>>, vector<1x8x128xf32>,
    %14 = vector.shape_cast %9 : vector<1x128xf32> to vector<1x1x128xf32>
    %15 = vector.shape_cast %14 : vector<1x1x128xf32> to vector<1x1x128xf32>
    %16 = vector.broadcast %15 : vector<1x1x128xf32> to vector<1x8x128xf32>
    %c0_10 = arith.constant 0 : index
    %c0_11 = arith.constant 0 : index
    %c0_12 = arith.constant 0 : index
    %17 = vector.load %arg5[%c0_10, %c0_11, %c0_12] : memref<1x8x128xf32, #tpu.memory_space<vmem>>, vector<1x8x128xf32>
    tpu.vector_store %arg5[%c0_10, %c0_11, %c0_12], %16 {strides = array<i32>} : memref<1x8x128xf32, #tpu.memory_space<vmem>>, vector<1x8x128xf32>,
    return
  }
  func.func @transform_0(%arg0: i32) -> (i32, i32) {
    %c0_i32 = arith.constant 0 : i32
    %c0_i32_0 = arith.constant 0 : i32
    return %arg0, %c0_i32 : i32, i32
  }
  func.func @transform_1(%arg0: i32) -> (i32, i32) {
    %c0_i32 = arith.constant 0 : i32
    %c0_i32_0 = arith.constant 0 : i32
    %c0_i32_1 = arith.constant 0 : i32
    return %c0_i32, %c0_i32_0 : i32, i32
  }
  func.func @transform_2(%arg0: i32) -> (i32, i32) {
    %c0_i32 = arith.constant 0 : i32
    %c0_i32_0 = arith.constant 0 : i32
    return %arg0, %c0_i32 : i32, i32
  }
  func.func @transform_3(%arg0: i32) -> (i32, i32, i32) {
    %c0_i32 = arith.constant 0 : i32
    %c0_i32_0 = arith.constant 0 : i32
    %c0_i32_1 = arith.constant 0 : i32
    return %arg0, %c0_i32, %c0_i32_0 : i32, i32, i32
  }
  func.func @transform_4(%arg0: i32) -> (i32, i32, i32) {
    %c0_i32 = arith.constant 0 : i32
    %c0_i32_0 = arith.constant 0 : i32
    %c0_i32_1 = arith.constant 0 : i32
    return %arg0, %c0_i32, %c0_i32_0 : i32, i32, i32
  }
}

</mosaic_0001>

<bundles_post_ra>
// kernel: tpu_custom_call.1
= control target key start
LH: loop header
LB: loop body
LE: loop exit
PB: predicated region body
PF: predicated region fallthrough
CT: control target
= control target key end

     0   :  { %6 = vsyncpa [#allocation3], 0  ;;  %s482_s0 = inlined_call_operand.hbm [shape: f32[8,128], index: 0, kind: input, shape index: {}]   ;;  %s483_s1 = inlined_call_operand.hbm [shape: f32[16,128], index: 1, kind: output, shape index: {}]  }
   0x1   :  { %7 = vsyncpa [#allocation4], 0 }
   0x2   :  { %9 = vsyncpa [#allocation4 + $0x1], 0  ;;  %s352_s6 = smov 0   ;;  %s354_s7 = smov 0  }
   0x3   :  { %s356_s8 = smov 0   ;;  %s358_s9 = smov 0  }
   0x4 LB: > { %s373_s10 = sadd.s32 4294967295, %s338_s9   ;;  %s184_s11 = sadd.s32 4294967294, %s338_s9   ;;  %s338_s9 = sphi %s358_s9, %s499_s9   ;;  %s334_s8 = sphi %s356_s8, %s498_s8   ;;  %s330_s7 = sphi %s354_s7, %s497_s7   ;;  %s326_s6 = sphi %s352_s6, %s496_s6  }
   0x5   : > { %s377_s12 = sadd.s32 1, %s338_s9   ;;  %s43_s13 = sadd.s32 1, %s334_s8 }
   0x6   : > { %s40_s14 = ssub.s32 %s338_s9, %s377_s12  ;;  %p53_p0 = scmp.ne.s32.totalorder %s334_s8, %s330_s7 }
   0x7   : > { %p41_p1 = scmp.eq.s32.totalorder %s40_s14, 0  ;;  %p54_p2 = scmp.eq.s32.totalorder %s373_s10, 1 }
   0x8   : > { %p59_p3 = scmp.ne.s32.totalorder %s330_s7, %s326_s6  ;;  %p60_p4 = scmp.eq.s32.totalorder %s184_s11, 1 }
   0x9   : > { %s388_s15 = scalar_select %p41_p1, %s334_s8, %s43_s13  }
   0xa   : > { %p390_p5 = por %p54_p2, %p53_p0  ;;  %p394_p6 = por %p60_p4, %p59_p3 }
   0xb   : > { %p185_p7 = scmp.ge.s32.totalorder %s338_s9, 1  ;;  %p67_p8 = scmp.lt.s32.totalorder %s338_s9, 3 }
   0xc   : > { %s487_s16 = scalar_select %p390_p5, 1, 0 }
   0xd   : > { %s488_s17 = scalar_select %p394_p6, 1, 0 }
   0xe   : > { %p484_p9 = scmp.eq.s32.totalorder %s373_s10, 0  ;;  %p401_p10 = pnand %p185_p7, %p67_p8 }
   0xf   : > { %s340_s19 = smov [#allocation2]   ;;  %s244_s24 = scalar_lea.hbm %s482_s0, 128 }
  0x10   : > { %s489_s18 = scalar_select %p401_p10, 1, 0 }
  0x11   : > { %s80_s20 = sshll.u32 %s340_s19, 4  ;;  %p200_p11 = pneg %p401_p10  ;;  %s81_s20 = int_to_ptr.vmem [resolvable:$true] %s80_s20 }
  0x12   : > { %p245_p13 = scmp.ne.s32.totalorder %s482_s0, %s244_s24  ;;  %p251_p3 = scmp.lt.u32.totalorder %s244_s24, %s482_s0 }
  0x13   : > { %p409_p12 = pnand %p484_p9, %p200_p11 }
  0x15   : > { %p246_p0 = pneg %p409_p12 }
  0x17   : > { %p247_p1 = pnand %p246_p0, %p245_p13 }
  0x19   : > { %p248_p2 = pneg %p247_p1 }
  0x1b   : > { %p253_p4 = pnand %p251_p3, %p248_p2 }
  0x1d   : > { %256 = shalt.err (!%p253_p4)
}
  0x1e   : > { %s257_s29 = scalar_lea.vmem %s81_s20, 128  ;;  %p265_p9 = scmp.lt.s32.totalorder %s81_s20, %s81_s20 }
  0x1f   : > { %p258_p7 = scmp.ne.s32.totalorder %s81_s20, %s257_s29  ;;  %p266_p6 = scmp.lt.s32.totalorder %s257_s29, %s257_s29 }
  0x21   : > { %p260_p8 = pnand %p258_p7, %p246_p0  ;;  %p267_p5 = por %p266_p6, %p265_p9 }
  0x23   : > { %p261_p11 = pneg %p260_p8 }
  0x25   : > { %p268_p10 = pnand %p267_p5, %p261_p11 }
  0x27   : > { %271 = shalt.err (!%p268_p10)
}
  0x28   : > { %203 = dma.hbm_to_vmem [thread:$0]  (!%p409_p12), %s482_s0, 128, %s81_s20, [#allocation3]  }
  0x29   : > { %p491_p13 = scmp.ne.s32.totalorder %s489_s18, 0 }
  0x2a   : > { %p492_p1 = scmp.eq.s32.totalorder (!%p491_p13), %s373_s10, 0 }
  0x2b   : > { %93 = sbr.rel (%p491_p13) target bundleno = 77 (0x4d), region = 24 }
  0x32   : > { %317 = dma.done.wait (%p492_p1), [#allocation3], 128   ;;  %p493_p0 = pmov %p492_p1 }
  0x33   : > { %s105_s3 = sand.u32 1, %s330_s7   ;;  %s191_s13 = sshll.u32 %s373_s10, 7  ;;  %v108_v0 = vld [vmem:[#allocation2] sm:$0xff] }
  0x34   : > { %319 = vsyncadd (%p493_p0), [#allocation3], 4294967168  ;;  %s189_s4 = sshll.u32 %s105_s3, 3  ;;  %v109_v1 = vadd.f32 1.0, %v108_v0  ;;  %s442_s19 = scalar_lea.hbm %s483_s1, %s191_s13 }
  0x35   : > { %s107_s5 = scalar_lea.vmem [#allocation5], %s189_s4  ;;  %s112_s20 = scalar_lea.sflag [#allocation4], %s105_s3 }
  0x36   : > { %s125_s11 = sshll.u32 %s107_s5, 4  ;;  %110 = vst [vmem:[%s107_s5] sm:$0xff] %v109_v1  ;;  %p494_p6 = scmp.ne.s32.totalorder %s487_s16, 0  ;;  %s437_s11 = int_to_ptr.vmem [resolvable:$true] %s125_s11 }
  0x37   : > { %s272_s21 = scalar_lea.vmem %s437_s11, 128  ;;  %s341_s10 = smov [#allocation5]  }
  0x38   : > { %p273_p5 = scmp.ne.s32.totalorder %s437_s11, %s272_s21  ;;  %s276_s22 = sshll.u32 %s341_s10, 4  ;;  %s277_s22 = int_to_ptr.vmem [resolvable:$false] %s276_s22 }
  0x39   : > { %s278_s23 = scalar_lea.vmem %s277_s22, 256  ;;  %p279_p12 = scmp.lt.s32.totalorder %s437_s11, %s277_s22 }
  0x3a   : > { %p274_p9 = pnand %p273_p5, %p494_p6  ;;  %p280_p2 = scmp.lt.s32.totalorder %s278_s23, %s272_s21 }
  0x3c   : > { %p275_p10 = pneg %p274_p9  ;;  %p281_p3 = por %p280_p2, %p279_p12 }
  0x3e   : > { %p282_p4 = pnand %p281_p3, %p275_p10 }
  0x40   : > { %285 = shalt.err (!%p282_p4)
}
  0x41   : > { %s286_s24 = scalar_lea.hbm %s442_s19, 128  ;;  %s290_s27 = scalar_lea.hbm %s483_s1, 256 }
  0x42   : > { %p287_p7 = scmp.ne.s32.totalorder %s442_s19, %s286_s24  ;;  %p291_p13 = scmp.lt.u32.totalorder %s442_s19, %s483_s1 }
  0x43   : > { %p292_p1 = scmp.lt.u32.totalorder %s290_s27, %s286_s24  ;;  %p294_p5 = scmp.lt.u32.totalorder %s286_s24, %s442_s19 }
  0x44   : > { %p288_p8 = pnand %p287_p7, %p494_p6 }
  0x45   : > { %p293_p0 = por %p292_p1, %p291_p13 }
  0x46   : > { %p289_p11 = pneg %p288_p8 }
  0x47   : > { %p295_p9 = por %p294_p5, %p293_p0 }
  0x49   : > { %p296_p10 = pnand %p295_p9, %p289_p11 }
  0x4b   : > { %299 = shalt.err (!%p296_p10)
}
  0x4c   : > { %198 = dma.vmem_to_hbm [thread:$0]  (%p494_p6), %s437_s11, 128, %s442_s19, %s112_s20  }
  0x4d PF: > { %p210_p12 = scmp.ge.s32.totalorder %s338_s9, 2  ;;  %s137_s30 = sand.u32 1, %s326_s6  }
  0x4e   : > { %p495_p2 = scmp.ne.s32.totalorder %s488_s17, 0  ;;  %s138_s2 = scalar_lea.sflag [#allocation4], %s137_s30 }
  0x50   : > { %p205_p3 = pnand %p210_p12, %p495_p2 }
  0x52   : > { %321 = dma.done.wait (!%p205_p3), %s138_s2, 128  }
  0x53   : > { %323 = vsyncadd (!%p205_p3), %s138_s2, 4294967168  ;;  %p12_p4 = scmp.ge.s32.totalorder %s377_s12, 4   ;;  %s496_s6 = smov %s330_s7 }
  0x54   : > { %s497_s7 = smov %s334_s8  ;;  %s498_s8 = smov %s388_s15 }
  0x55   : > { %s499_s9 = smov %s377_s12  ;;  %14 = sbr.rel (!%p12_p4) target bundleno = 4 (0x4), region = 61 }
  0x5c   :  { %143 = vsyncpa [#allocation3], 1 }
  0x5d   :  { %145 = vsyncpa [#allocation3 + $0x1], 1 }
  0x5e   :  { %146 = vsyncpa [#allocation4], 1 }
  0x5f   :  { %148 = vsyncpa [#allocation4 + $0x1], 1 }

// kernel: tpu_custom_call.1
= control target key start
LH: loop header
LB: loop body
LE: loop exit
PB: predicated region body
PF: predicated region fallthrough
CT: control target
= control target key end

     0   :  { %10 = vsyncpa [#allocation3], 0  ;;  %s1280_s0 = inlined_call_operand.hbm [shape: bf16[96,128], index: 0, kind: input, shape index: {}]   ;;  %s1281_s1 = inlined_call_operand.hbm [shape: bf16[128,128], index: 1, kind: input, shape index: {}]   ;;  %s1282_s2 = inlined_call_operand.hbm [shape: bf16[96,128], index: 2, kind: output, shape index: {0}]   ;;  %s1283_s3 = inlined_call_operand.hbm [shape: f32[3,8,128], index: 3, kind: output, shape index: {1}]   ;;  %s1284_s4 = inlined_call_operand.hbm [shape: f32[3,8,128], index: 4, kind: output, shape index: {2}]  }
   0x1   :  { %12 = vsyncpa [#allocation3 + $0x1], 0 }
   0x2   :  { %13 = vsyncpa [#allocation6], 0 }
   0x3   :  { %14 = vsyncpa [#allocation4], 0 }
   0x4   :  { %16 = vsyncpa [#allocation4 + $0x1], 0 }
   0x5   :  { %17 = vsyncpa [#allocation9], 0 }
   0x6   :  { %19 = vsyncpa [#allocation9 + $0x1], 0  ;;  %s1007_s15 = smov 0   ;;  %s1009_s16 = smov 0  }
   0x7   :  { %s1011_s17 = smov 0   ;;  %s1013_s18 = smov 0  }
   0x8 LB: > { %s1028_s19 = sadd.s32 4294967295, %s971_s18   ;;  %s619_s20 = sadd.s32 4294967294, %s971_s18   ;;  %s971_s18 = sphi %s1013_s18, %s1303_s18   ;;  %s967_s17 = sphi %s1011_s17, %s1302_s17   ;;  %s963_s16 = sphi %s1009_s16, %s1301_s16   ;;  %s959_s15 = sphi %s1007_s15, %s1300_s15  }
   0x9   : > { %p45_p0 = scmp.ne.s32.totalorder %s963_s16, %s959_s15  ;;  %p1285_p1 = scmp.eq.s32.totalorder %s1028_s19, 0 }
   0xa   : > { %p96_p3 = scmp.eq.s32.totalorder %s619_s20, 2  ;;  %p620_p5 = scmp.ge.s32.totalorder %s971_s18, 1 }
   0xb   : > { %p1039_p4 = por %p1285_p1, %p45_p0  ;;  %p155_p7 = scmp.lt.s32.totalorder %s971_s18, 4 }
   0xc   : > { %p1044_p6 = por %p96_p3, %p45_p0  ;;  %s973_s24 = smov [#allocation5]  }
   0xd   : > { %s1288_s21 = scalar_select %p1039_p4, 1, 0 }
   0xe   : > { %s1289_s22 = scalar_select %p1044_p6, 1, 0 }
   0xf   : > { %p1049_p8 = pnand %p620_p5, %p155_p7  ;;  %s167_s25 = sshll.u32 %s973_s24, 4  ;;  %s168_s25 = int_to_ptr.vmem [resolvable:$true] %s167_s25 }
  0x10   : > { %s1062_s27 = sadd.s32 1, %s971_s18   ;;  %s32_s28 = sadd.s32 1, %s967_s17 }
  0x11   : > { %s1290_s23 = scalar_select %p1049_p8, 1, 0 }
  0x12   : > { %p714_p9 = pneg %p1049_p8  ;;  %s29_s29 = ssub.s32 %s971_s18, %s1062_s27 }
  0x13   : > { %s783_s6 = scalar_lea.hbm %s1281_s1, 1024 }
  0x14   : > { %p1057_p10 = pnand %p714_p9, %p1285_p1  ;;  %p784_p11 = scmp.ne.s32.totalorder %s1281_s1, %s783_s6 }
  0x15   : > { %p790_p3 = scmp.lt.u32.totalorder %s783_s6, %s1281_s1 }
  0x16   : > { %p785_p12 = pneg %p1057_p10 }
  0x18   : > { %p786_p13 = pnand %p785_p12, %p784_p11 }
  0x1a   : > { %p787_p0 = pneg %p786_p13 }
  0x1c   : > { %p792_p5 = pnand %p790_p3, %p787_p0 }
  0x1e   : > { %795 = shalt.err (!%p792_p5)
}
  0x1f   : > { %s796_s11 = scalar_lea.vmem %s168_s25, 1024  ;;  %p804_p2 = scmp.lt.s32.totalorder %s168_s25, %s168_s25 }
  0x20   : > { %p797_p7 = scmp.ne.s32.totalorder %s168_s25, %s796_s11  ;;  %p805_p6 = scmp.lt.s32.totalorder %s796_s11, %s796_s11 }
  0x22   : > { %p799_p9 = pnand %p797_p7, %p785_p12  ;;  %p806_p4 = por %p805_p6, %p804_p2 }
  0x24   : > { %p800_p1 = pneg %p799_p9 }
  0x26   : > { %p807_p8 = pnand %p806_p4, %p800_p1 }
  0x28   : > { %810 = shalt.err (!%p807_p8)
}
  0x29   : > { %s974_s12 = smov 64   ;;  %s975_s13 = smov 4  }
  0x2a   : > { %717 = dma.hbm_to_vmem [thread:$0]  (!%p1057_p10), %s1281_s1, 1024, %s168_s25, [#allocation6], %s974_s12, %s974_s12, %s975_s13  }
  0x2b   : > { %p30_p1 = scmp.eq.s32.totalorder %s29_s29, 0  ;;  %p39_p2 = scmp.ne.s32.totalorder %s967_s17, %s963_s16 }
  0x2c   : > { %p40_p4 = scmp.eq.s32.totalorder %s971_s18, 0  ;;  %p733_p6 = scmp.lt.s32.totalorder %s971_s18, 3 }
  0x2d   : > { %s1091_s30 = scalar_select %p30_p1, %s967_s17, %s32_s28  }
  0x2e   : > { %p41_p8 = por %p40_p4, %p39_p2  ;;  %p1292_p11 = scmp.eq.s32.totalorder %s1028_s19, 2 }
  0x2f   : > { %s181_s26 = sand.u32 1, %s967_s17   ;;  %s655_s6 = sshll.u32 %s971_s18, 8 }
  0x30   : > { %p1095_p12 = por %p1292_p11, %p39_p2  ;;  %s623_s7 = sshll.u32 %s181_s26, 4 }
  0x31   : > { %s1104_s10 = scalar_lea.hbm %s1280_s0, %s655_s6  ;;  %s185_s25 = scalar_lea.vmem [#allocation2], %s623_s7 }
  0x32   : > { %s192_s28 = sshll.u32 %s185_s25, 4  ;;  %p1106_p10 = pnand %p733_p6, %p41_p8  ;;  %s1110_s28 = int_to_ptr.vmem [resolvable:$true] %s192_s28 }
  0x33   : > { %s1112_s11 = scalar_lea.sflag [#allocation3], %s181_s26  ;;  %s811_s14 = scalar_lea.hbm %s1104_s10, 256 }
  0x34   : > { %p812_p13 = scmp.ne.s32.totalorder %s1104_s10, %s811_s14  ;;  %p813_p0 = pneg %p1106_p10 }
  0x35   : > { %s816_s7 = scalar_lea.hbm %s1280_s0, 768  ;;  %p817_p7 = scmp.lt.u32.totalorder %s1104_s10, %s1280_s0 }
  0x36   : > { %p814_p3 = pnand %p813_p0, %p812_p13  ;;  %p818_p9 = scmp.lt.u32.totalorder %s816_s7, %s811_s14 }
  0x37   : > { %p820_p2 = scmp.lt.u32.totalorder %s811_s14, %s1104_s10 }
  0x38   : > { %p815_p5 = pneg %p814_p3  ;;  %p819_p1 = por %p818_p9, %p817_p7 }
  0x3a   : > { %p821_p4 = por %p820_p2, %p819_p1 }
  0x3c   : > { %p822_p6 = pnand %p821_p4, %p815_p5 }
  0x3e   : > { %825 = shalt.err (!%p822_p6)
}
  0x3f   : > { %s826_s26 = scalar_lea.vmem %s1110_s28, 256  ;;  %s976_s25 = smov [#allocation2]  }
  0x40   : > { %p827_p8 = scmp.ne.s32.totalorder %s1110_s28, %s826_s26  ;;  %s831_s24 = sshll.u32 %s976_s25, 4  ;;  %s832_s24 = int_to_ptr.vmem [resolvable:$false] %s831_s24 }
  0x41   : > { %s833_s6 = scalar_lea.vmem %s832_s24, 512  ;;  %p834_p3 = scmp.lt.s32.totalorder %s1110_s28, %s832_s24 }
  0x42   : > { %p829_p11 = pnand %p827_p8, %p813_p0  ;;  %p835_p7 = scmp.lt.s32.totalorder %s833_s6, %s826_s26 }
  0x44   : > { %p830_p13 = pneg %p829_p11  ;;  %p836_p9 = por %p835_p7, %p834_p3 }
  0x46   : > { %p837_p1 = pnand %p836_p9, %p830_p13 }
  0x48   : > { %840 = shalt.err (!%p837_p1)
}
  0x49   : > { %721 = dma.hbm_to_vmem [thread:$0]  (!%p1106_p10), %s1104_s10, 256, %s1110_s28, %s1112_s11, %s974_s12, %s974_s12, %s975_s13  }
  0x4a   : > { %p1295_p0 = scmp.ne.s32.totalorder %s1290_s23, 0 }
  0x4b   : > { %s1146_s14 = sand.u32 (!%p1295_p0), 1, %s963_s16   ;;  %p1296_p5 = scmp.ne.s32.totalorder (!%p1295_p0), %s1288_s21, 0 }
  0x4c   : > { %204 = sbr.rel (%p1295_p0) target bundleno = 401 (0x191), region = 28  ;;  %s627_s7 = sshll.u32 (!%p1295_p0), %s1146_s14, 4 }
  0x4d   : > { %s207_s8 = scalar_lea.sflag (!%p1295_p0), [#allocation3], %s1146_s14  ;;  %s210_s29 = scalar_lea.vmem (!%p1295_p0), [#allocation2], %s627_s7 }
  0x53   : > { %942 = dma.done.wait (%p1296_p5), %s207_s8, 256  }
  0x54   : > { %944 = vsyncadd (%p1296_p5), %s207_s8, 4294967040  ;;  %p1297_p10 = scmp.eq.s32.totalorder %s1028_s19, 0 }
  0x56   : > { %946 = dma.done.wait (%p1297_p10), [#allocation6], 1024   ;;  %p1298_p2 = pmov %p1297_p10 }
  0x57   : > { %v773_v0 = vld [vmem:[#allocation5] sm:$0xff]   ;;  %v774_v1 = vld [vmem:[#allocation5 + $0x8] sm:$0xff]   ;;  %v775_v2 = vld [vmem:[#allocation5 + $0x10] sm:$0xff]   ;;  %s234_s21 = scalar_lea.vmem [#allocation7], %s627_s7  ;;  %s660_s12 = sshll.u32 %s1028_s19, 8 }
  0x58   : > { %948 = vsyncadd (%p1298_p2), [#allocation6], 4294966272  ;;  %682 = vmatprep.subr.bf16.mxu0 %v773_v0  ;;  %v776_v3 = vld [vmem:[#allocation5 + $0x18] sm:$0xff]   ;;  %v781_v4 = vld [vmem:[%s210_s29] sm:$0xff]   ;;  %s449_s23 = sshll.u32 %s234_s21, 4  ;;  %s1168_s28 = scalar_lea.hbm %s1282_s2, %s660_s12  ;;  %s1163_s23 = int_to_ptr.vmem [resolvable:$true] %s449_s23 }
  0x59   : > { %683 = vmatpush3.bf16.msra.mxu0 %v773_v0  ;;  %698 = vmatprep.mubr.bf16.mxu0 %v781_v4  ;;  %v777_v5 = vld [vmem:[#allocation5 + $0x20] sm:$0xff]   ;;  %v778_v6 = vld [vmem:[#allocation5 + $0x28] sm:$0xff]   ;;  %v779_v7 = vld [vmem:[#allocation5 + $0x30] sm:$0xff]   ;;  %s426_s11 = scalar_lea.sflag [#allocation4], %s1146_s14  ;;  %s841_s9 = scalar_lea.vmem %s1163_s23, 256 }
  0x5a   : > { %684 = vmatprep.subr.bf16.mxu0 %v774_v1  ;;  %v780_v8 = vld [vmem:[#allocation5 + $0x38] sm:$0xff]   ;;  %p842_p4 = scmp.ne.s32.totalorder %s1163_s23, %s841_s9  ;;  %s977_s26 = smov [#allocation7]  }
  0x5b   : > { %v782_v9 = vld [vmem:[%s210_s29 + $0x8] sm:$0xff]   ;;  %s845_s25 = sshll.u32 %s977_s26, 4  ;;  %s846_s25 = int_to_ptr.vmem [resolvable:$false] %s845_s25 }
  0x5c   : > { %p843_p6 = pnand %p842_p4, %p1095_p12  ;;  %s847_s24 = scalar_lea.vmem %s846_s25, 512 }
  0x5d   : > { %685 = vmatpush3.bf16.msra.mxu0 %v774_v1  ;;  %p848_p11 = scmp.lt.s32.totalorder %s1163_s23, %s846_s25  ;;  %p849_p13 = scmp.lt.s32.totalorder %s847_s24, %s841_s9 }
  0x5e   : > { %686 = vmatprep.subr.bf16.mxu0 %v775_v2  ;;  %p844_p8 = pneg %p843_p6 }
  0x5f   : > { %p850_p3 = por %p849_p13, %p848_p11 }
  0x61   : > { %687 = vmatpush3.bf16.msra.mxu0 %v775_v2  ;;  %p851_p7 = pnand %p850_p3, %p844_p8 }
  0x62   : > { %688 = vmatprep.subr.bf16.mxu0 %v776_v3 }
  0x65   : > { %689 = vmatpush3.bf16.msra.mxu0 %v776_v3 }
  0x66   : > { %690 = vmatprep.subr.bf16.mxu0 %v777_v5 }
  0x69   : > { %691 = vmatpush3.bf16.msra.mxu0 %v777_v5 }
  0x6a   : > { %692 = vmatprep.subr.bf16.mxu0 %v778_v6 }
  0x6d   : > { %693 = vmatpush3.bf16.msra.mxu0 %v778_v6 }
  0x6e   : > { %694 = vmatprep.subr.bf16.mxu0 %v779_v7 }
  0x71   : > { %695 = vmatpush3.bf16.msra.mxu0 %v779_v7 }
  0x72   : > { %696 = vmatprep.subr.bf16.mxu0 %v780_v8 }
  0x75   : > { %697 = vmatpush3.bf16.msra.mxu0 %v780_v8 }
  0x78   : > { %699 = vmatmul.mubr.bf16.vlgmr.msra.gmra.mrb[0].mxu0 %v782_v9 }
 0x14b   : > { %v700_v10 = vpop.f32.mrb[0].mxu0 }
 0x14c   : > { %v366_v11 = vpop.f32.mrb[1].mxu0  ;;  %v412_v19 = vmul.f32 %v700_v10, %v700_v10 }
 0x14d   : > { %v701_v12 = vpop.f32.mrb[2].mxu0  ;;  %v410_v15 = vmul.f32 %v366_v11, %v366_v11 }
 0x14e   : > { %v669_v13 = vpack.c.bf16 %v701_v12, %v700_v10  ;;  %v369_v14 = vpop.f32.mrb[3].mxu0 }
 0x14f   : > { %v664_v16 = vpack.c.bf16 %v369_v14, %v366_v11  ;;  %v401_v17 = vadd.f32 %v369_v14, %v366_v11  ;;  %v411_v18 = vmul.f32 %v369_v14, %v369_v14 }
 0x150   : > { %671 = vst [vmem:[%s234_s21 + $0x8] sm:$0xff] %v669_v13  }
 0x151   : > { %665 = vst [vmem:[%s234_s21] sm:$0xff] %v664_v16   ;;  %v402_v20 = vadd.f32 %v700_v10, %v401_v17  ;;  %v414_v21 = vadd.f32 %v411_v18, %v410_v15 }
 0x152   : > { %854 = shalt.err (!%p851_p7)
}
 0x153   : > { %s855_s6 = scalar_lea.hbm %s1168_s28, 256  ;;  %s859_s29 = scalar_lea.hbm %s1282_s2, 768 }
 0x154   : > { %p856_p9 = scmp.ne.s32.totalorder %s1168_s28, %s855_s6  ;;  %p860_p5 = scmp.lt.u32.totalorder %s1168_s28, %s1282_s2 }
 0x155   : > { %p861_p10 = scmp.lt.u32.totalorder %s859_s29, %s855_s6  ;;  %p863_p4 = scmp.lt.u32.totalorder %s855_s6, %s1168_s28 }
 0x156   : > { %p857_p1 = pnand %p856_p9, %p1095_p12 }
 0x157   : > { %p862_p2 = por %p861_p10, %p860_p5 }
 0x158   : > { %p858_p0 = pneg %p857_p1 }
 0x159   : > { %p864_p6 = por %p863_p4, %p862_p2 }
 0x15b   : > { %p865_p8 = pnand %p864_p6, %p858_p0 }
 0x15d   : > { %868 = shalt.err (!%p865_p8)
}
 0x15e   : > { %s978_s13 = smov 64   ;;  %s979_s10 = smov 4   ;;  %v413_v22 = vmul.f32 %v701_v12, %v701_v12  ;;  %v403_v23 = vadd.f32 %v701_v12, %v402_v20  ;;  %v415_v24 = vadd.f32 %v414_v21, %v412_v19 }
 0x15f   : > { %708 = dma.vmem_to_hbm [thread:$0]  (%p1095_p12), %s1163_s23, 256, %s1168_s28, %s426_s11, %s978_s13, %s978_s13, %s979_s10  }
 0x160   : > { %v404_v25 = vrot.slane %v403_v23, 4  ;;  %v416_v26 = vadd.f32 %v415_v24, %v413_v22  ;;  %s630_s9 = sshll.u32 %s1146_s14, 3  ;;  %s430_s26 = sand.u32 1, %s1028_s19  }
 0x161   : > { %s651_s25 = sshll.u32 %s1028_s19, 7  ;;  %s241_s24 = scalar_lea.vmem [#allocation8], %s630_s9 }
 0x162   : > { %v405_v27 = vadd.f32 %v404_v25, %v403_v23  ;;  %v417_v28 = vrot.slane %v416_v26, 4  ;;  %s465_s6 = sshll.u32 %s241_s24, 4  ;;  %s1197_s23 = scalar_lea.vmem [#allocation10], %s630_s9  ;;  %s1205_s6 = int_to_ptr.vmem [resolvable:$true] %s465_s6 }
 0x163   : > { %s478_s28 = sshll.u32 %s1197_s23, 4  ;;  %s1203_s7 = scalar_lea.hbm %s1283_s3, %s651_s25  ;;  %s1212_s28 = int_to_ptr.vmem [resolvable:$true] %s478_s28 }
 0x164   : > { %v406_v29 = vrot.slane %v405_v27, 2  ;;  %v418_v30 = vadd.f32 %v417_v28, %v416_v26  ;;  %s1210_s29 = scalar_lea.hbm %s1284_s4, %s651_s25  ;;  %s1214_s21 = scalar_lea.sflag [#allocation9], %s430_s26 }
 0x165   : > { %s869_s12 = scalar_lea.vmem %s1205_s6, 128  ;;  %s980_s13 = smov [#allocation8]  }
 0x166   : > { %v407_v31 = vadd.f32 %v406_v29, %v405_v27  ;;  %v419_v32 = vrot.slane %v418_v30, 2  ;;  %p870_p11 = scmp.ne.s32.totalorder %s1205_s6, %s869_s12  ;;  %s873_s10 = sshll.u32 %s980_s13, 4  ;;  %s874_s10 = int_to_ptr.vmem [resolvable:$false] %s873_s10 }
 0x167   : > { %s875_s9 = scalar_lea.vmem %s874_s10, 256  ;;  %p876_p7 = scmp.lt.s32.totalorder %s1205_s6, %s874_s10 }
 0x168   : > { %v408_v33 = vrot.slane %v407_v31, 1  ;;  %v420_v34 = vadd.f32 %v419_v32, %v418_v30  ;;  %p871_p13 = pnand %p870_p11, %p1095_p12  ;;  %p877_p9 = scmp.lt.s32.totalorder %s875_s9, %s869_s12 }
 0x16a   : > { %v421_v35 = vrot.slane %v420_v34, 1  ;;  %v409_v36 = vadd.f32 %v408_v33, %v407_v31  ;;  %p872_p3 = pneg %p871_p13  ;;  %p878_p1 = por %p877_p9, %p876_p7 }
 0x16c   : > { %423 = vst [vmem:[%s241_s24] sm:$0xff] %v409_v36  ;;  %v422_v37 = vadd.f32 %v421_v35, %v420_v34  ;;  %p879_p0 = pnand %p878_p1, %p872_p3 }
 0x16e   : > { %882 = shalt.err (!%p879_p0)
}
 0x16f   : > { %s883_s26 = scalar_lea.hbm %s1203_s7, 128  ;;  %s887_s14 = scalar_lea.hbm %s1283_s3, 384 }
 0x170   : > { %p884_p5 = scmp.ne.s32.totalorder %s1203_s7, %s883_s26  ;;  %p888_p4 = scmp.lt.u32.totalorder %s1203_s7, %s1283_s3 }
 0x171   : > { %p889_p6 = scmp.lt.u32.totalorder %s887_s14, %s883_s26  ;;  %p891_p11 = scmp.lt.u32.totalorder %s883_s26, %s1203_s7 }
 0x172   : > { %p885_p10 = pnand %p884_p5, %p1095_p12 }
 0x173   : > { %p890_p8 = por %p889_p6, %p888_p4 }
 0x174   : > { %p886_p2 = pneg %p885_p10 }
 0x175   : > { %p892_p13 = por %p891_p11, %p890_p8 }
 0x177   : > { %p893_p3 = pnand %p892_p13, %p886_p2 }
 0x179   : > { %896 = shalt.err (!%p893_p3)
}
 0x17a   : > { %709 = dma.vmem_to_hbm [thread:$0]  (%p1095_p12), %s1205_s6, 128, %s1203_s7, %s1214_s21   ;;  %424 = vst [vmem:[%s1197_s23] sm:$0xff] %v422_v37 }
 0x17b   : > { %s897_s8 = scalar_lea.vmem %s1212_s28, 128  ;;  %s981_s12 = smov [#allocation10]  }
 0x17c   : > { %p898_p7 = scmp.ne.s32.totalorder %s1212_s28, %s897_s8  ;;  %s901_s13 = sshll.u32 %s981_s12, 4  ;;  %s902_s13 = int_to_ptr.vmem [resolvable:$false] %s901_s13 }
 0x17d   : > { %s903_s10 = scalar_lea.vmem %s902_s13, 256  ;;  %p904_p0 = scmp.lt.s32.totalorder %s1212_s28, %s902_s13 }
 0x17e   : > { %p899_p9 = pnand %p898_p7, %p1095_p12  ;;  %p905_p5 = scmp.lt.s32.totalorder %s903_s10, %s897_s8 }
 0x180   : > { %p900_p1 = pneg %p899_p9  ;;  %p906_p10 = por %p905_p5, %p904_p0 }
 0x182   : > { %p907_p2 = pnand %p906_p10, %p900_p1 }
 0x184   : > { %910 = shalt.err (!%p907_p2)
}
 0x185   : > { %s911_s6 = scalar_lea.hbm %s1210_s29, 128  ;;  %s915_s9 = scalar_lea.hbm %s1284_s4, 384 }
 0x186   : > { %p912_p4 = scmp.ne.s32.totalorder %s1210_s29, %s911_s6  ;;  %p916_p11 = scmp.lt.u32.totalorder %s1210_s29, %s1284_s4 }
 0x187   : > { %p917_p13 = scmp.lt.u32.totalorder %s915_s9, %s911_s6  ;;  %p919_p7 = scmp.lt.u32.totalorder %s911_s6, %s1210_s29 }
 0x188   : > { %p913_p6 = pnand %p912_p4, %p1095_p12 }
 0x189   : > { %p918_p3 = por %p917_p13, %p916_p11 }
 0x18a   : > { %p914_p8 = pneg %p913_p6 }
 0x18b   : > { %p920_p9 = por %p919_p7, %p918_p3 }
 0x18d   : > { %p921_p1 = pnand %p920_p9, %p914_p8 }
 0x18f   : > { %924 = shalt.err (!%p921_p1)
}
 0x190   : > { %710 = dma.vmem_to_hbm [thread:$0]  (%p1095_p12), %s1212_s28, 128, %s1210_s29, %s1214_s21  }
 0x191 PF: > { %p735_p0 = scmp.ge.s32.totalorder %s971_s18, 2  ;;  %s490_s24 = sand.u32 1, %s959_s15  }
 0x192   : > { %p1299_p5 = scmp.ne.s32.totalorder %s1289_s22, 0  ;;  %s491_s14 = scalar_lea.sflag [#allocation4], %s490_s24 }
 0x194   : > { %p723_p10 = pnand %p735_p0, %p1299_p5 }
 0x196   : > { %950 = dma.done.wait (!%p723_p10), %s491_s14, 256  }
 0x197   : > { %952 = vsyncadd (!%p723_p10), %s491_s14, 4294967040  ;;  %s499_s11 = sand.u32 1, %s619_s20  }
 0x198   : > { %s500_s19 = scalar_lea.sflag [#allocation9], %s499_s11 }
 0x199   : > { %954 = dma.done.wait (!%p723_p10), %s500_s19, 256  }
 0x19a   : > { %956 = vsyncadd (!%p723_p10), %s500_s19, 4294967040  ;;  %p22_p12 = scmp.ge.s32.totalorder %s1062_s27, 5   ;;  %s1300_s15 = smov %s963_s16 }
 0x19b   : > { %s1301_s16 = smov %s967_s17  ;;  %s1302_s17 = smov %s1091_s30 }
 0x19c   : > { %s1303_s18 = smov %s1062_s27  ;;  %24 = sbr.rel (!%p22_p12) target bundleno = 8 (0x8), region = 109 }
 0x1a3   :  { %514 = vsyncpa [#allocation3], 1 }
 0x1a4   :  { %516 = vsyncpa [#allocation3 + $0x1], 1 }
 0x1a5   :  { %517 = vsyncpa [#allocation6], 1 }
 0x1a6   :  { %518 = vsyncpa [#allocation4], 1 }
 0x1a7   :  { %520 = vsyncpa [#allocation4 + $0x1], 1 }
 0x1a8   :  { %521 = vsyncpa [#allocation9], 1 }
 0x1a9   :  { %523 = vsyncpa [#allocation9 + $0x1], 1 }

</bundles_post_ra>
